<compile_context>
chip_gen: v7x
topology: tpu7x:2x2x1
jax: 0.10.0
libtpu: 0.0.40
codegen_flags: <defaults>
</compile_context>

<pallas_src>
import math
import functools

import jax
import jax.numpy as jnp
from jax.experimental import pallas as pl
from jax.experimental.pallas import tpu as pltpu


# ----------------------------------------------------------------------------
# ROI / gradient-loss kernel: one image (all channels) per grid step
# ----------------------------------------------------------------------------
def _roi_loss_kernel(t1_ref, t2_ref, xhat_ref, mask_ref, out_ref):
    """Per-image partial sums packed into a lane-dense (1, 128) row.

    lanes: 0 sum(m*|dI|), 1 sum(|dI|), 2 sum(m*|dG|), 3 sum(|dG|), rest zero.
    Background sums are derived in the wrapper as total - ROI (mask binary).
    """
    C, H, W = t1_ref.shape
    # Binarize the mask once per image (shared over channels), matching
    # torch.where(mask > 0, 1, 0) in the reference.
    m = (mask_ref[...] > 0).astype(jnp.float32)

    # Boundary-validity masks as (H,1)/(1,W) iota compares; jnp.where
    # broadcasts them (no materialized (H,W) iota/zero tensors).
    row_idx = jax.lax.broadcasted_iota(jnp.int32, (H, 1), 0)
    col_idx = jax.lax.broadcasted_iota(jnp.int32, (1, W), 1)
    row_ok_m1 = row_idx >= 1        # reading x[i-1, j]
    row_ok_p1 = row_idx < H - 1     # reading x[i+1, j]
    col_ok_m1 = col_idx >= 1        # reading x[i, j-1]
    col_ok_p1 = col_idx < W - 1     # reading x[i, j+1]

    def shift_left(a):              # a[i, j-1], zero 'same' padding
        return jnp.where(col_ok_m1, pltpu.roll(a, 1, axis=1), 0.0)

    def shift_right(a):             # a[i, j+1]
        return jnp.where(col_ok_p1, pltpu.roll(a, W - 1, axis=1), 0.0)

    def sobel_mag(x):
        # factored shifts: 2 row rolls + 6 column rolls, shared by Gx and Gy
        up = jnp.where(row_ok_m1, pltpu.roll(x, 1, axis=0), 0.0)      # x[i-1, j]
        dn = jnp.where(row_ok_p1, pltpu.roll(x, H - 1, axis=0), 0.0)  # x[i+1, j]
        tl, tr = shift_left(up), shift_right(up)
        bl, br = shift_left(dn), shift_right(dn)
        l, r = shift_left(x), shift_right(x)
        gx = (tr - tl) + 2.0 * (r - l) + (br - bl)
        gy = (bl - tl) + 2.0 * (dn - up) + (br - tr)
        return jnp.abs(gx) + jnp.abs(gy)

    s_m_int = 0.0
    s_int = 0.0
    s_m_grad = 0.0
    s_grad = 0.0
    for c in range(C):              # static unroll; C is small (e.g. 3)
        t1 = t1_ref[c].astype(jnp.float32)
        t2 = t2_ref[c].astype(jnp.float32)
        xh = xhat_ref[c].astype(jnp.float32)
        # intensity: | x_hat - max(t1, t2) |
        diff_int = jnp.abs(xh - jnp.maximum(t1, t2))
        # gradient: | |grad x_hat| - max(|grad t1|, |grad t2|) |
        diff_grad = jnp.abs(sobel_mag(xh)
                            - jnp.maximum(sobel_mag(t1), sobel_mag(t2)))
        s_m_int = s_m_int + jnp.sum(m * diff_int)
        s_int = s_int + jnp.sum(diff_int)     # bg derived as total - ROI later
        s_m_grad = s_m_grad + jnp.sum(m * diff_grad)
        s_grad = s_grad + jnp.sum(diff_grad)

    lane = jax.lax.broadcasted_iota(jnp.int32, (1, 128), 1)
    out_ref[...] = (jnp.where(lane == 0, s_m_int, 0.0)
                    + jnp.where(lane == 1, s_int, 0.0)
                    + jnp.where(lane == 2, s_m_grad, 0.0)
                    + jnp.where(lane == 3, s_grad, 0.0))


# ----------------------------------------------------------------------------
# bpp kernel: tiled sum(log(x)) with in-kernel ragged-tail masking
# ----------------------------------------------------------------------------
def _logsum_kernel(x_ref, o_ref, *, scale, rows_total):
    tr = x_ref.shape[0]
    row0 = pl.program_id(0) * tr
    ridx = row0 + jax.lax.broadcasted_iota(jnp.int32, (tr, 1), 0)
    x = x_ref[...].astype(jnp.float32)
    # Rows past the logical end (partial last block) contain garbage -> force
    # them to 1.0 so log() contributes exactly 0 (no padded HBM copy needed).
    x = jnp.where(ridx < rows_total, x, 1.0)
    o_ref[...] = jnp.full((1, 128), jnp.sum(jnp.log(x)) * scale, jnp.float32)


# ----------------------------------------------------------------------------
# wrappers
# ----------------------------------------------------------------------------
def _roi_vmem_limit(c, h, w):
    slab = h * w * 4
    # 3 image inputs (C slabs each) + 1 mask slab, double-buffered, plus
    # ~20 slab-sized Sobel temporaries.  Clamp to [32, 64] MiB so the same
    # value is legal on v5e/v6e (128 MiB physical) and v7x (64 MiB physical).
    est = 2 * (3 * c + 1) * slab + 20 * slab
    return int(min(max(2 * est, 32 * 1024 * 1024), 64 * 1024 * 1024))


def roi_losses(target1, target2, x_hat, mask):
    """Returns (pixel_ROI, grad_ROI, pixel_bg, grad_bg) as F.l1_loss-style means."""
    N, C, H, W = target1.shape
    img_spec = pl.BlockSpec((None, C, H, W), lambda n: (n, 0, 0, 0))
    mask_spec = pl.BlockSpec((None, None, H, W), lambda n: (n, 0, 0, 0))
    out_spec = pl.BlockSpec((None, 1, 128), lambda n: (n, 0, 0))

    parts = pl.pallas_call(
        _roi_loss_kernel,
        grid=(N,),
        in_specs=[img_spec, img_spec, img_spec, mask_spec],
        out_specs=out_spec,
        out_shape=jax.ShapeDtypeStruct((N, 1, 128), jnp.float32),
        compiler_params=pltpu.CompilerParams(
            dimension_semantics=("parallel",),
            vmem_limit_bytes=_roi_vmem_limit(C, H, W)),
    )(target1, target2, x_hat, mask)

    sums = jnp.sum(parts[:, 0, :], axis=0)          # (128,)
    inv_n = 1.0 / float(target1.size)               # mean over N*C*H*W elements
    p_roi = sums[0] * inv_n
    p_bg = (sums[1] - sums[0]) * inv_n              # bg = total - ROI (mask 0/1)
    g_roi = sums[2] * inv_n
    g_bg = (sums[3] - sums[2]) * inv_n
    return p_roi, g_roi, p_bg, g_bg


_BPP_TARGET_BLOCK_BYTES = 2 * 1024 * 1024           # >= 1 MiB blocks (roofline)


def _bpp_sum_one(x, scale):
    """sum(log(x)) * scale for one likelihood tensor (no concat, no padding copy)."""
    x = jnp.asarray(x)
    if x.ndim == 0:
        return jnp.log(x.astype(jnp.float32)) * scale
    last = int(x.shape[-1])
    rows = int(x.size // last)
    x2 = x.reshape(rows, last)                       # contiguous reshape: free

    itemsize = jnp.dtype(x2.dtype).itemsize
    tr = max(8, _BPP_TARGET_BLOCK_BYTES // max(1, last * itemsize))
    tr = (tr + 7) // 8 * 8                           # sublane multiple
    tr = min(tr, (rows + 7) // 8 * 8)                # do not exceed (padded) rows
    nblocks = (rows + tr - 1) // tr

    parts = pl.pallas_call(
        functools.partial(_logsum_kernel, scale=scale, rows_total=rows),
        grid=(nblocks,),
        in_specs=[pl.BlockSpec((tr, last), lambda i: (i, 0))],
        out_specs=pl.BlockSpec((None, 1, 128), lambda i: (i, 0, 0)),
        out_shape=jax.ShapeDtypeStruct((nblocks, 1, 128), jnp.float32),
        compiler_params=pltpu.CompilerParams(
            dimension_semantics=("parallel",),
            vmem_limit_bytes=32 * 1024 * 1024),
    )(x2)
    return jnp.sum(parts[:, 0, 0])


def bpp_loss_from_likelihoods(likelihoods, num_pixels):
    """sum_k sum(log(L_k)) / (-log(2) * num_pixels); one streaming pass per L_k."""
    # NOTE: assumes likelihoods > 0 (guaranteed by the entropy model).
    scale = 1.0 / (-math.log(2) * num_pixels)
    total = jnp.zeros((), jnp.float32)
    for v in likelihoods.values():
        total = total + _bpp_sum_one(v, scale)
    return total


class RateDistortionLoss:
    """JAX/Pallas port of the PyTorch RateDistortionLoss module."""

    def __init__(self, lmbda=0.01, type='mse'):
        self.lmbda = lmbda
        self.type = type  # unused in forward (as in the reference)

    def __call__(self, output, target1, target2, mask, device=None):
        N, _, H, W = target1.shape
        num_pixels = N * H * W
        out = {}

        out['bpp_loss'] = bpp_loss_from_likelihoods(output['likelihoods'],
                                                    num_pixels)

        p_roi, g_roi, p_bg, g_bg = roi_losses(target1, target2,
                                              output['x_hat'], mask)
        out['pixel_loss_ROI'] = p_roi
        out['grad_loss_ROI'] = g_roi
        out['pixel_loss_bg'] = p_bg
        out['grad_loss_bg'] = g_bg

        # torch.mean(mask) / torch.mean(1 - mask) on the binarized mask —
        # cheap elementwise+reduce, done as a plain XLA op (per perf review).
        mask_bin = jnp.where(mask > 0, 1.0, 0.0).astype(jnp.float32)
        w_roi = jnp.mean(mask_bin)
        w_bg = 1.0 - w_roi

        # (w_roi + w_bg) == 1 exactly, but kept to mirror the reference.
        out['ROI'] = (p_roi + g_roi) * w_roi / (w_roi + w_bg)
        out['bg'] = (p_bg + g_bg) * w_bg / (w_roi + w_bg)
        out['content_loss'] = out['ROI'] * 2 * 500
        out['loss'] = self.lmbda * out['content_loss'] + out['bpp_loss']
        return out


# ----------------------------------------------------------------------------
# demo
# ----------------------------------------------------------------------------
if __name__ == "__main__":
    key = jax.random.PRNGKey(0)
    kt1, kt2, kx, km, ky, kz = jax.random.split(key, 6)

    N, C, H, W = 2, 3, 32, 128
    target1 = jax.random.uniform(kt1, (N, C, H, W), jnp.float32)
    target2 = jax.random.uniform(kt2, (N, C, H, W), jnp.float32)
    x_hat = jax.random.uniform(kx, (N, C, H, W), jnp.float32)
    mask = jax.random.uniform(km, (N, 1, H, W), jnp.float32) - 0.5  # +/- values

    # synthetic entropy-model likelihoods in (0, 1]
    lik_y = jax.random.uniform(ky, (N, 8, H // 4, W // 4), jnp.float32,
                               minval=1e-3, maxval=1.0)
    lik_z = jax.random.uniform(kz, (N, 4, H // 8, W // 8), jnp.float32,
                               minval=1e-3, maxval=1.0)
    output = {'x_hat': x_hat, 'likelihoods': {'y': lik_y, 'z': lik_z}}

    criterion = RateDistortionLoss(lmbda=0.01)
    out = criterion(output, target1, target2, mask, device=None)
    jax.block_until_ready(out['loss'])
    print("KERNEL_OK")
</pallas_src>

<mosaic_0001>
module attributes {stable_mosaic.version = 11 : i64} {
  func.func @_logsum_kernel(%arg0: i32, %arg1: memref<128x32xf32, #tpu.memory_space<vmem>>, %arg2: memref<1x1x128xf32, #tpu.memory_space<vmem>>) attributes {dimension_semantics = [#tpu.dimension_semantics<parallel>], iteration_bounds = array<i64: 1>, scalar_prefetch = 0 : i64, scratch_operands = 0 : i64, tpu.core_type = #tpu.core_type<tc>, window_params = [{transform_indices = @transform_0, window_bounds = array<i64: 128, 32>}, {transform_indices = @transform_1, window_bounds = array<i64: 1, 1, 128>}]} {
    %c128_i32 = arith.constant 128 : i32
    %0 = arith.muli %arg0, %c128_i32 : i32
    %1 = tpu.iota {dimensions = array<i32: 0>} : vector<128x1xi32>
    %2 = vector.broadcast %0 : i32 to vector<128x1xi32>
    %3 = arith.addi %2, %1 : vector<128x1xi32>
    %c0 = arith.constant 0 : index
    %c0_0 = arith.constant 0 : index
    %4 = vector.load %arg1[%c0, %c0_0] : memref<128x32xf32, #tpu.memory_space<vmem>>, vector<128x32xf32>
    %c128_i32_1 = arith.constant 128 : i32
    %5 = vector.broadcast %c128_i32_1 : i32 to vector<128x1xi32>
    %6 = arith.cmpi slt, %3, %5 : vector<128x1xi32>
    %cst = arith.constant 1.000000e+00 : f32
    %7 = vector.shape_cast %6 : vector<128x1xi1> to vector<128x1xi1>
    %8 = vector.broadcast %7 : vector<128x1xi1> to vector<128x32xi1>
    %9 = vector.broadcast %cst : f32 to vector<128x32xf32>
    %10 = arith.select %8, %4, %9 : vector<128x32xi1>, vector<128x32xf32>
    %11 = math.log %10 : vector<128x32xf32>
    %12 = vector.shape_cast %11 : vector<128x32xf32> to vector<1x128x32xf32>
    %cst_2 = arith.constant dense<0.000000e+00> : vector<1xf32>
    %13 = vector.multi_reduction <add>, %12, %cst_2 [1, 2] : vector<1x128x32xf32> to vector<1xf32>
    %14 = vector.shape_cast %13 : vector<1xf32> to vector<1x1x1xf32>
    %15 = vector.extract %14[0, 0, 0] : f32 from vector<1x1x1xf32>
    %cst_3 = arith.constant -1.76110232E-4 : f32
    %16 = arith.mulf %15, %cst_3 : f32
    %17 = vector.broadcast %16 : f32 to vector<1x128xf32>
    %c0_4 = arith.constant 0 : index
    %c0_5 = arith.constant 0 : index
    %c0_6 = arith.constant 0 : index
    %18 = vector.load %arg2[%c0_4, %c0_5, %c0_6] : memref<1x1x128xf32, #tpu.memory_space<vmem>>, vector<1x1x128xf32>
    %19 = vector.shape_cast %18 : vector<1x1x128xf32> to vector<1x128xf32>
    %20 = vector.shape_cast %17 : vector<1x128xf32> to vector<1x1x128xf32>
    tpu.vector_store %arg2[%c0_4, %c0_5, %c0_6], %20 {strides = array<i32>} : memref<1x1x128xf32, #tpu.memory_space<vmem>>, vector<1x1x128xf32>,
    return
  }
  func.func @transform_0(%arg0: i32) -> (i32, i32) {
    %c0_i32 = arith.constant 0 : i32
    %c0_i32_0 = arith.constant 0 : i32
    return %arg0, %c0_i32 : i32, i32
  }
  func.func @transform_1(%arg0: i32) -> (i32, i32, i32) {
    %c0_i32 = arith.constant 0 : i32
    %c0_i32_0 = arith.constant 0 : i32
    %c0_i32_1 = arith.constant 0 : i32
    return %arg0, %c0_i32, %c0_i32_0 : i32, i32, i32
  }
}

</mosaic_0001>

<bundles_post_ra>
// kernel: tpu_custom_call.1
= control target key start
LH: loop header
LB: loop body
LE: loop exit
PB: predicated region body
PF: predicated region fallthrough
CT: control target
= control target key end

     0   :  { %s360_s0 = inlined_call_operand.vmem [shape: f32[128,32], index: 0, kind: input, shape index: {}]   ;;  %s361_s1 = inlined_call_operand.hbm [shape: f32[1,1,128], index: 1, kind: output, shape index: {}]  }
   0x1   :  { %v44_v0 = vld [vmem:[%s360_s0] sm:$0xff]  ;;  %v45_v1 = vld [vmem:[%s360_s0 + $0x8] sm:$0xff]  ;;  %v46_v2 = vld [vmem:[%s360_s0 + $0x10] sm:$0xff] }
   0x2   :  { %v47_v3 = vld [vmem:[%s360_s0 + $0x18] sm:$0xff]  ;;  %217 = vlog2.f32 %v44_v0  ;;  %v48_v4 = vld [vmem:[%s360_s0 + $0x20] sm:$0xff]  ;;  %v49_v5 = vld [vmem:[%s360_s0 + $0x28] sm:$0xff] }
   0x3   :  { %219 = vlog2.f32 %v45_v1  ;;  %v50_v6 = vld [vmem:[%s360_s0 + $0x30] sm:$0xff]  ;;  %v51_v7 = vld [vmem:[%s360_s0 + $0x38] sm:$0xff] }
   0x4   :  { %221 = vlog2.f32 %v46_v2 }
   0x5   :  { %223 = vlog2.f32 %v47_v3 }
   0x6   :  { %225 = vlog2.f32 %v48_v4 }
   0x7   :  { %6 = vsyncpa [#allocation3], 0  ;;  %227 = vlog2.f32 %v49_v5  ;;  %v52_v8 = vld [vmem:[%s360_s0 + $0x40] sm:$0xff]  ;;  %v53_v9 = vld [vmem:[%s360_s0 + $0x48] sm:$0xff]  ;;  %vm156_vm0 = vcmask 261120  }
   0x8   :  { %229 = vlog2.f32 %v50_v6  ;;  %v54_v11 = vld [vmem:[%s360_s0 + $0x50] sm:$0xff]  ;;  %v55_v15 = vld [vmem:[%s360_s0 + $0x58] sm:$0xff]  ;;  %v56_v21 = vld [vmem:[%s360_s0 + $0x60] sm:$0xff] }
   0x9   :  { %231 = vlog2.f32 %v51_v7  ;;  %v57_v29 = vld [vmem:[%s360_s0 + $0x68] sm:$0xff]  ;;  %v58_v34 = vld [vmem:[%s360_s0 + $0x70] sm:$0xff]  ;;  %v59_v39 = vld [vmem:[%s360_s0 + $0x78] sm:$0xff]  ;;  %s273_s0 = smov [#allocation2]  }
   0xa   :  { %233 = vlog2.f32 %v52_v8  ;;  %s206_s9 = sshll.u32 %s273_s0, 4  ;;  %s207_s9 = int_to_ptr.vmem [resolvable:$true] %s206_s9 }
   0xb   :  { %235 = vlog2.f32 %v53_v9  ;;  %s249_s12 = scalar_lea.vmem %s207_s9, 16  ;;  %s253_s13 = scalar_lea.vmem %s207_s9, 32 }
   0xc   :  { %v218_v10 = vpop.eup %217  ;;  %237 = vlog2.f32 %v54_v11  ;;  %p250_p0 = scmp.ne.s32.totalorder %s207_s9, %s249_s12  ;;  %p254_p1 = scmp.lt.s32.totalorder %s207_s9, %s207_s9 }
   0xd   :  { %v220_v12 = vpop.eup %219  ;;  %v125_v13 = vmul.f32 0.6931472, %v218_v10  ;;  %239 = vlog2.f32 %v55_v15  ;;  %p255_p2 = scmp.lt.s32.totalorder %s253_s13, %s249_s12 }
   0xe   :  { %v222_v14 = vpop.eup %221  ;;  %v127_v16 = vmul.f32 0.6931472, %v220_v12  ;;  %241 = vlog2.f32 %v56_v21 }
   0xf   :  { %v224_v17 = vpop.eup %223  ;;  %v129_v18 = vmul.f32 0.6931472, %v222_v14  ;;  %v157_v19 = vsel %vm156_vm0, %v125_v13, 0.0  ;;  %243 = vlog2.f32 %v57_v29  ;;  %p256_p3 = por %p255_p2, %p254_p1 }
  0x10   :  { %v226_v20 = vpop.eup %225  ;;  %v131_v22 = vmul.f32 0.6931472, %v224_v17  ;;  %v158_v23 = vsel %vm156_vm0, %v127_v16, 0.0  ;;  %245 = vlog2.f32 %v58_v34 }
  0x11   :  { %v228_v24 = vpop.eup %227  ;;  %v133_v25 = vmul.f32 0.6931472, %v226_v20  ;;  %v159_v26 = vadd.f32 %v158_v23, %v157_v19  ;;  %v160_v27 = vsel %vm156_vm0, %v129_v18, 0.0  ;;  %247 = vlog2.f32 %v59_v39  ;;  %p257_p4 = pnand %p256_p3, %p250_p0 }
  0x12   :  { %v230_v28 = vpop.eup %229  ;;  %v135_v30 = vmul.f32 0.6931472, %v228_v24  ;;  %v162_v31 = vsel %vm156_vm0, %v131_v22, 0.0 }
  0x13   :  { %v232_v32 = vpop.eup %231  ;;  %v161_v33 = vadd.f32 %v160_v27, %v159_v26  ;;  %v137_v35 = vmul.f32 0.6931472, %v230_v28  ;;  %v164_v36 = vsel %vm156_vm0, %v133_v25, 0.0 }
  0x14   :  { %v234_v37 = vpop.eup %233  ;;  %v139_v40 = vmul.f32 0.6931472, %v232_v32  ;;  %v166_v41 = vsel %vm156_vm0, %v135_v30, 0.0 }
  0x15   :  { %v163_v38 = vadd.f32 %v162_v31, %v161_v33  ;;  %v236_v42 = vpop.eup %235  ;;  %v141_v44 = vmul.f32 0.6931472, %v234_v37  ;;  %v168_v45 = vsel %vm156_vm0, %v137_v35, 0.0 }
  0x16   :  { %v238_v46 = vpop.eup %237  ;;  %v143_v48 = vmul.f32 0.6931472, %v236_v42  ;;  %v170_v49 = vsel %vm156_vm0, %v139_v40, 0.0 }
  0x17   :  { %v165_v43 = vadd.f32 %v164_v36, %v163_v38  ;;  %v240_v50 = vpop.eup %239  ;;  %v145_v52 = vmul.f32 0.6931472, %v238_v46  ;;  %v172_v53 = vsel %vm156_vm0, %v141_v44, 0.0 }
  0x18   :  { %v242_v54 = vpop.eup %241  ;;  %v147_v56 = vmul.f32 0.6931472, %v240_v50  ;;  %v174_v57 = vsel %vm156_vm0, %v143_v48, 0.0 }
  0x19   :  { %v167_v47 = vadd.f32 %v166_v41, %v165_v43  ;;  %v244_v58 = vpop.eup %243  ;;  %v149_v60 = vmul.f32 0.6931472, %v242_v54  ;;  %v176_v61 = vsel %vm156_vm0, %v145_v52, 0.0 }
  0x1a   :  { %v246_v62 = vpop.eup %245  ;;  %v151_v0 = vmul.f32 0.6931472, %v244_v58  ;;  %v178_v1 = vsel %vm156_vm0, %v147_v56, 0.0 }
  0x1b   :  { %v169_v51 = vadd.f32 %v168_v45, %v167_v47  ;;  %v248_v2 = vpop.eup %247  ;;  %v153_v4 = vmul.f32 0.6931472, %v246_v62  ;;  %v180_v5 = vsel %vm156_vm0, %v149_v60, 0.0 }
  0x1c   :  { %v155_v7 = vmul.f32 0.6931472, %v248_v2  ;;  %v182_v8 = vsel %vm156_vm0, %v151_v0, 0.0 }
  0x1d   :  { %v171_v55 = vadd.f32 %v170_v49, %v169_v51  ;;  %v184_v10 = vsel %vm156_vm0, %v153_v4, 0.0 }
  0x1e   :  { %v186_v12 = vsel %vm156_vm0, %v155_v7, 0.0 }
  0x1f   :  { %v173_v59 = vadd.f32 %v172_v53, %v171_v55 }
  0x21   :  { %v175_v63 = vadd.f32 %v174_v57, %v173_v59 }
  0x23   :  { %v177_v3 = vadd.f32 %v176_v61, %v175_v63 }
  0x25   :  { %v179_v6 = vadd.f32 %v178_v1, %v177_v3 }
  0x27   :  { %v181_v9 = vadd.f32 %v180_v5, %v179_v6 }
  0x29   :  { %v183_v11 = vadd.f32 %v182_v8, %v181_v9 }
  0x2b   :  { %v185_v13 = vadd.f32 %v184_v10, %v183_v11 }
  0x2d   :  { %v187_v14 = vadd.f32 %v186_v12, %v185_v13 }
  0x2f   :  { %188 = vadd.xlane.f32.xlu0 %v187_v14 }
  0xbc   :  { %v189_v15 = vpop.xlane.xlu0 %188 }
  0xbd   :  { %v190_v16 = vrot.slane %v189_v15, 4 }
  0xbf   :  { %v191_v17 = vadd.f32 %v190_v16, %v189_v15 }
  0xc1   :  { %v192_v18 = vrot.slane %v191_v17, 2 }
  0xc3   :  { %v193_v19 = vadd.f32 %v192_v18, %v191_v17 }
  0xc5   :  { %v194_v20 = vrot.slane %v193_v19, 1 }
  0xc7   :  { %v195_v21 = vadd.f32 %v194_v20, %v193_v19 }
  0xc9   :  { %214 = vpush %v195_v21 }
  0xfa   :  { %s215_s10 = spop %214 }
  0xfb   :  { %s197_s11 = smul.f32 -0.00017611023, %s215_s10 }
  0xfd   :  { %v198_v22 = vstv %s197_s11 }
  0xfe   :  { %199 = vst [vmem:[#allocation2] sm:$0x1] %v198_v22 }
  0xff   :  { %260 = shalt.err (!%p257_p4)
}
 0x100   :  { %s261_s16 = scalar_lea.hbm %s361_s1, 16 }
 0x101   :  { %p262_p5 = scmp.ne.s32.totalorder %s361_s1, %s261_s16  ;;  %p265_p6 = scmp.lt.u32.totalorder %s261_s16, %s361_s1 }
 0x103   :  { %p267_p7 = pnand %p265_p6, %p262_p5 }
 0x105   :  { %270 = shalt.err (!%p267_p7)
}
 0x106   :  { %209 = dma.vmem_to_hbm [thread:$0]  %s207_s9, 16, %s361_s1, [#allocation3]  }
 0x107   :  { %271 = dma.done.wait [#allocation3], 16  }
 0x108   :  { %272 = vsyncadd [#allocation3], 4294967280 }
 0x109   :  { %213 = vsyncpa [#allocation3], 1 }

</bundles_post_ra>
